<compile_context>
chip_gen: v5e
topology: v5e:2x2
jax: 0.10.0
libtpu: 0.0.40
codegen_flags: <defaults>
</compile_context>

<pallas_src>
import jax
import jax.numpy as jnp
from jax.experimental import pallas as pl
from jax.experimental.pallas import tpu as pltpu


# Per-block budget.  4 live double-buffered blocks (2 in + 2 out) => ~8 MiB,
# which fits v5e's 16 MiB scoped-VMEM default with headroom and is tiny on
# v6e/v7x.  >=2 MiB blocks already sit at ~85% of the HBM roofline.
_BLOCK_BYTES_BUDGET = 2 * 1024 * 1024


def _copy_kernel(src_ref, dst_ref):
    # Pure block copy; BlockSpecs do the channel slicing via the flattened
    # row-prefix (fast path) or the leading-channel block (fallback path).
    dst_ref[...] = src_ref[...]


def _sublane_min(itemsize):
    """Minimum sublane tile for this dtype (VMEM tiles are (8/16/32, 128))."""
    if itemsize >= 4:
        return 8
    if itemsize == 2:
        return 16
    return 32


def _round_down(x, m):
    return (x // m) * m


def _largest_divisor_mult_128(n, cap):
    """Largest divisor of n (n % 128 == 0) that is a multiple of 128 and <= cap."""
    best = 0
    m = n // 128
    d = 1
    while d * d <= m:
        if m % d == 0:
            for q in (d, m // d):
                c = q * 128
                if c <= cap:
                    best = max(best, c)
        d += 1
    return best


def _fast_path_tiles(B, n_out, itemsize):
    """Pick (bt, chunk) so that bt*chunk*itemsize <= _BLOCK_BYTES_BUDGET."""
    smin = _sublane_min(itemsize)
    budget_elems = max(_BLOCK_BYTES_BUDGET // itemsize, smin * 128)

    # Lane chunk: budget the FULL block assuming the minimum legal sublane
    # tile (smin rows), so bt can always be at least smin without blowing up.
    chunk_cap = max(128, min(_round_down(budget_elems // smin, 128), n_out))
    div_chunk = _largest_divisor_mult_128(n_out, chunk_cap)
    if div_chunk >= max(chunk_cap // 2, 128):
        chunk = div_chunk          # exact tiling, no ragged edge
    else:
        chunk = chunk_cap          # large chunk, one ragged edge block (cdiv)

    # Batch tile: full B if it fits the remaining budget, else a multiple of
    # the dtype sublane tile (ragged batch edge handled by cdiv grid).
    rows_cap = max(smin, budget_elems // chunk)
    if B <= rows_cap:
        bt = B
    else:
        bt = max(smin, _round_down(rows_cap, smin))

    # v7x: guarantee >=2 parallel grid steps for >1 MiB slices so both
    # TensorCores (and both HBM paths) get work.  No-op on v5e/v6e (1 TC).
    if (pl.cdiv(B, bt) * pl.cdiv(n_out, chunk) == 1
            and B * n_out * itemsize > (1 << 20)):
        if chunk % 256 == 0:
            chunk //= 2
        elif bt >= 2 * smin and bt % (2 * smin) == 0:
            bt //= 2

    return bt, chunk


def cnn_single_forward(pts, viewdirs, features):
    """Pallas implementation of CNNsingle.forward: returns features[:, :3].

    pts / viewdirs are accepted for signature parity and are unused, exactly
    as in the reference PyTorch forward.
    """
    del pts, viewdirs  # unused in the reference forward
    B, C, H, W = features.shape
    assert C >= 3, "need at least 3 channels to slice"
    dtype = features.dtype
    itemsize = jnp.dtype(dtype).itemsize
    hw = H * W
    n_out = 3 * hw

    cost = pl.CostEstimate(
        flops=0, transcendentals=0, bytes_accessed=2 * B * n_out * itemsize)

    if n_out % 128 == 0:
        # Fast lane-dense path: each row of (B, C*H*W) holds channels 0..2 as
        # its contiguous prefix of length 3*H*W.  Copy that prefix in blocks
        # of (bt, chunk) with chunk a large multiple of 128 (full-width
        # unmasked vld/vst).  Ragged edge blocks (when chunk does not divide
        # n_out) are clipped by Pallas: OOB output lanes are discarded and the
        # extra input lanes (channel >=3 data) are never written.
        bt, chunk = _fast_path_tiles(B, n_out, itemsize)
        src = features.reshape(B, C * hw)          # zero-cost layout plumbing
        grid = (pl.cdiv(B, bt), pl.cdiv(n_out, chunk))
        out2 = pl.pallas_call(
            _copy_kernel,
            out_shape=jax.ShapeDtypeStruct((B, n_out), dtype),
            grid_spec=pltpu.PrefetchScalarGridSpec(
                num_scalar_prefetch=0,
                grid=grid,
                in_specs=[pl.BlockSpec((bt, chunk), lambda b, c: (b, c))],
                out_specs=pl.BlockSpec((bt, chunk), lambda b, c: (b, c)),
            ),
            compiler_params=pltpu.CompilerParams(
                dimension_semantics=("parallel", "parallel")),
            cost_estimate=cost,
        )(src)
        return out2.reshape(B, 3, H, W)

    # Fallback (3*H*W not a multiple of 128): lane-dense by flattening H,W
    # into one full-extent lane dim, so the last two block dims equal the full
    # array dims (legal for any H, W) and stores stay wide/unmasked instead of
    # using only W of 128 lanes.
    smin = _sublane_min(itemsize)
    budget_elems = max(_BLOCK_BYTES_BUDGET // itemsize, 1)
    rows_cap = max(1, budget_elems // n_out)
    if B <= rows_cap:
        bt = B
    elif rows_cap >= smin:
        bt = _round_down(rows_cap, smin)
    else:
        bt = 1  # block may exceed budget for huge H*W; unavoidable without
        #        splitting the (non-128-aligned) lane dim.
    src = features.reshape(B, C, 1, hw)
    out = pl.pallas_call(
        _copy_kernel,
        out_shape=jax.ShapeDtypeStruct((B, 3, 1, hw), dtype),
        grid_spec=pltpu.PrefetchScalarGridSpec(
            num_scalar_prefetch=0,
            grid=(pl.cdiv(B, bt),),
            in_specs=[pl.BlockSpec((bt, 3, 1, hw), lambda b: (b, 0, 0, 0))],
            out_specs=pl.BlockSpec((bt, 3, 1, hw), lambda b: (b, 0, 0, 0)),
        ),
        compiler_params=pltpu.CompilerParams(
            dimension_semantics=("parallel",)),
        cost_estimate=cost,
    )(src)
    return out.reshape(B, 3, H, W)


def init_params(inChanel=4, viewpe=6, feape=6, featureC=128, seed=0):
    """Mirror CNNsingle.__init__ parameter shapes (never used in forward)."""
    in_mlpC = 2 * viewpe * 3 + 2 * feape * inChanel + 3 + inChanel
    kw, kb = jax.random.split(jax.random.PRNGKey(seed))
    conv_w = jax.random.normal(kw, (3, in_mlpC, 3, 3), jnp.float32) * 0.02
    conv_b = jax.random.normal(kb, (3,), jnp.float32) * 0.02
    # NOTE: the conv parameters are dead code in CNNsingle.forward.
    return {"conv_w": conv_w, "conv_b": conv_b}


def _run_case(key, B, C, H, W, dtype):
    k1, k2, k3 = jax.random.split(key, 3)
    pts = jax.random.normal(k1, (B, 3, H, W), jnp.float32).astype(dtype)
    viewdirs = jax.random.normal(k2, (B, 3, H, W), jnp.float32).astype(dtype)
    features = jax.random.normal(k3, (B, C, H, W), jnp.float32).astype(dtype)
    rgb = jax.block_until_ready(cnn_single_forward(pts, viewdirs, features))
    ref = features[:, :3]
    assert rgb.shape == (B, 3, H, W), rgb.shape
    assert rgb.dtype == dtype, rgb.dtype
    assert jnp.array_equal(rgb, ref), f"mismatch vs features[:, :3] ({dtype})"


if __name__ == "__main__":
    _ = init_params(inChanel=4)  # deterministic param init (unused in forward)

    key = jax.random.PRNGKey(0)
    k_a, k_b, k_c = jax.random.split(key, 3)

    # Fast lane-dense path (H*W multiple of 128), f32.
    _run_case(k_a, B=2, C=4, H=16, W=16, dtype=jnp.float32)
    # Fallback path (3*H*W not a multiple of 128), odd B / extra channels.
    _run_case(k_b, B=3, C=5, H=12, W=12, dtype=jnp.float32)
    # Packed dtype (bf16) exercises the dtype-aware sublane tiling.
    _run_case(k_c, B=2, C=4, H=16, W=16, dtype=jnp.bfloat16)

    print("KERNEL_OK")
</pallas_src>

<mosaic_0001>
module attributes {stable_mosaic.version = 11 : i64} {
  func.func @_copy_kernel(%arg0: i32, %arg1: i32, %arg2: memref<2x768xf32, #tpu.memory_space<vmem>>, %arg3: memref<2x768xf32, #tpu.memory_space<vmem>>) attributes {dimension_semantics = [#tpu.dimension_semantics<parallel>, #tpu.dimension_semantics<parallel>], iteration_bounds = array<i64: 1, 1>, scalar_prefetch = 0 : i64, scratch_operands = 0 : i64, tpu.core_type = #tpu.core_type<tc>, window_params = [{transform_indices = @transform_0, window_bounds = array<i64: 2, 768>}, {transform_indices = @transform_1, window_bounds = array<i64: 2, 768>}]} {
    %c0 = arith.constant 0 : index
    %c0_0 = arith.constant 0 : index
    %0 = vector.load %arg2[%c0, %c0_0] : memref<2x768xf32, #tpu.memory_space<vmem>>, vector<2x768xf32>
    %c0_1 = arith.constant 0 : index
    %c0_2 = arith.constant 0 : index
    %1 = vector.load %arg3[%c0_1, %c0_2] : memref<2x768xf32, #tpu.memory_space<vmem>>, vector<2x768xf32>
    tpu.vector_store %arg3[%c0_1, %c0_2], %0 {strides = array<i32>} : memref<2x768xf32, #tpu.memory_space<vmem>>, vector<2x768xf32>,
    return
  }
  func.func @transform_0(%arg0: i32, %arg1: i32) -> (i32, i32) {
    %c0_i32 = arith.constant 0 : i32
    return %arg0, %arg1 : i32, i32
  }
  func.func @transform_1(%arg0: i32, %arg1: i32) -> (i32, i32) {
    %c0_i32 = arith.constant 0 : i32
    return %arg0, %arg1 : i32, i32
  }
}

</mosaic_0001>

<bundles_post_ra>
// kernel: tpu_custom_call.1
= control target key start
LH: loop header
LB: loop body
LE: loop exit
PB: predicated region body
PF: predicated region fallthrough
CT: control target
= control target key end

     0   :  { %6 = vsyncpa [#allocation3], 0  ;;  %s116_s0 = inlined_call_operand.hbm [shape: f32[2,1024], index: 0, kind: input, shape index: {}]   ;;  %s117_s1 = inlined_call_operand.hbm [shape: f32[2,768], index: 1, kind: output, shape index: {}]  }
   0x1   :  { %7 = vsyncpa [#allocation4], 0  ;;  %s13_s8 = sshll.u32 %s116_s0, 4  ;;  %s98_s9 = smov [#allocation2]   ;;  %s14_s8 = int_to_ptr.hbm [resolvable:$true] %s13_s8 }
   0x2   :  { %s15_s10 = sshll.u32 %s98_s9, 4  ;;  %s16_s10 = int_to_ptr.vmem [resolvable:$true] %s15_s10 }
   0x3   :  { %18 = dma.hbm_to_vmem [thread:$0]  %s14_s8, 192, %s16_s10, [#allocation3]  }
   0x4   :  { %94 = dma.done.wait [#allocation3], 192  }
   0x5   :  { %95 = vsyncadd [#allocation3], 4294967104  ;;  %s99_s11 = smov [#allocation5]   ;;  %s34_s15 = sshll.u32 %s117_s1, 4  ;;  %v23_v0 = vld [vmem:[#allocation2] sm:$0xff]  ;;  %s35_s15 = int_to_ptr.hbm [resolvable:$true] %s34_s15 }
   0x6   :  { %s32_s12 = sshll.u32 %s99_s11, 4  ;;  %v24_v1 = vld [vmem:[#allocation2 + $0x8] sm:$0xf]  ;;  %25 = vst [vmem:[#allocation5] sm:$0xff] %v23_v0  ;;  %s33_s12 = int_to_ptr.vmem [resolvable:$true] %s32_s12 }
   0x7   :  { %26 = vst [vmem:[#allocation5 + $0x8] sm:$0xf] %v24_v1 }
   0x8   :  { %37 = dma.vmem_to_hbm [thread:$0]  %s33_s12, 192, %s35_s15, [#allocation4]  }
   0x9   :  { %96 = dma.done.wait [#allocation4], 192  }
   0xa   :  { %97 = vsyncadd [#allocation4], 4294967104 }
   0xb   :  { %42 = vsyncpa [#allocation3], 1 }
   0xc   :  { %43 = vsyncpa [#allocation4], 1 }

</bundles_post_ra>
